<compile_context>
chip_gen: v7x
topology: tpu7x:2x2x1
jax: 0.10.0
libtpu: 0.0.40
codegen_flags: <defaults>
</compile_context>

<pallas_src>
import jax
import jax.numpy as jnp
from jax.experimental import pallas as pl
from jax.experimental.pallas import tpu as pltpu


# ----------------------------- helpers ------------------------------------ #

def _round_up(a: int, b: int) -> int:
    return -(-a // b) * b


def _cdiv(a: int, b: int) -> int:
    return -(-a // b)


def _sublane_granule(itemsize: int) -> int:
    # f32 -> 8, bf16/f16 -> 16, int8/fp8 -> 32 (packed sublane granularity).
    return max(8, 32 // max(int(itemsize), 1))


def _pick_tile(dim_padded: int, want: int, granule: int) -> int:
    """Largest granule-aligned tile <= want, preferring exact divisors of
    dim_padded (zero padding); falls back to `want` (pad) only when the best
    divisor is < want/2."""
    want = max(granule, (int(want) // granule) * granule)
    t = min(want, dim_padded)
    t = max(granule, (t // granule) * granule)
    best = granule
    cand = t
    while cand >= granule:
        if dim_padded % cand == 0:
            best = cand
            break
        cand -= granule
    return best if best * 2 >= t else t


def _halve(t: int, granule: int) -> int:
    return max(granule, ((t // 2) // granule) * granule)


def _vmem_capacity_bytes() -> int:
    try:
        return int(pltpu.get_tpu_info().vmem_capacity_bytes)
    except Exception:
        return 64 << 20  # conservative (v7x per-TC size) if query unavailable


def prepare_weight(weight):
    """One-time [d_out, d_in] -> [d_in, d_out] transpose.  Call at parameter
    creation / load time and pass the result with weight_is_transposed=True so
    the forward pays no per-call transpose HBM pass."""
    return jnp.swapaxes(weight, 0, 1)


# ----------------------------- kernels ------------------------------------ #

def _matmul_kernel_single_k(x_ref, w_ref, o_ref):
    """Full-K tile: one MXU matmul straight into the output tile."""
    o_ref[...] = jnp.dot(
        x_ref[...], w_ref[...], preferred_element_type=jnp.float32
    ).astype(o_ref.dtype)


def _matmul_kernel_acc_inplace(x_ref, w_ref, o_ref):
    """Multi-K tile, f32 output: accumulate directly into the resident output
    tile (no scratch, no final copy)."""
    @pl.when(pl.program_id(2) == 0)
    def _():
        o_ref[...] = jnp.zeros_like(o_ref)

    o_ref[...] += jnp.dot(
        x_ref[...], w_ref[...], preferred_element_type=jnp.float32
    )


def _matmul_kernel_acc_scratch(x_ref, w_ref, o_ref, acc_ref):
    """Multi-K tile, sub-f32 output: accumulate in an f32 scratch, cast once."""
    @pl.when(pl.program_id(2) == 0)
    def _():
        acc_ref[...] = jnp.zeros_like(acc_ref)

    acc_ref[...] += jnp.dot(
        x_ref[...], w_ref[...], preferred_element_type=jnp.float32
    )

    @pl.when(pl.program_id(2) == pl.num_programs(2) - 1)
    def _():
        o_ref[...] = acc_ref[...].astype(o_ref.dtype)


# ----------------------------- wrapper ------------------------------------ #

def custom_mlp_layer_forward(x, weight, *, tm=512, tn=1024, tk=2048,
                             compute_dtype=None, weight_is_transposed=False,
                             weight_buffers=2):
    """Pallas equivalent of CustomMLPLayer.forward: x @ weight.T.

    x:       [batch, seq, d_in]
    weight:  [d_out, d_in]  (PyTorch nn.Linear convention), or
             [d_in, d_out]  if weight_is_transposed=True (see prepare_weight).
    returns  [batch, seq, d_out] in x.dtype.

    compute_dtype: optionally cast operands (e.g. jnp.bfloat16) before the
    matmul; accumulation is f32 and the output keeps x.dtype.
    """
    batch, seq, d_in = x.shape
    if weight_is_transposed:
        d_in_w, d_out = weight.shape
        w_t = weight                      # already [d_in, d_out]
    else:
        d_out, d_in_w = weight.shape
        # NOTE: this is a per-call HBM transpose; prefer prepare_weight() once.
        w_t = jnp.swapaxes(weight, 0, 1)
    assert d_in == d_in_w, "weight inner dim must match x hidden dim"

    out_dtype = x.dtype
    out_is_f32 = jnp.dtype(out_dtype) == jnp.dtype(jnp.float32)
    M = batch * seq

    x2d = x.reshape(M, d_in)
    if compute_dtype is not None:
        x2d = x2d.astype(compute_dtype)
        w_t = w_t.astype(compute_dtype)

    x_item = jnp.dtype(x2d.dtype).itemsize
    w_item = jnp.dtype(w_t.dtype).itemsize
    o_item = jnp.dtype(out_dtype).itemsize

    # ---- tile selection: generation-aware VMEM budget, divisor-preferring ----
    m_gran = _sublane_granule(x_item)
    Mp0 = _round_up(M, m_gran)
    Kp0 = _round_up(d_in, 128)
    Np0 = _round_up(d_out, 128)

    tm = _pick_tile(Mp0, tm, m_gran)
    tn = _pick_tile(Np0, tn, 128)
    tk = _pick_tile(Kp0, tk, 128)

    # v7x has 2 TensorCores: if the parallel (i, j) grid would be 1x1, split the
    # output/lane axis so both cores get a block (near-free on v5e/v6e).
    if _cdiv(Mp0, tm) == 1 and _cdiv(Np0, tn) == 1 and Np0 >= 256:
        cand = tn - 128
        while cand >= 128:
            if Np0 % cand == 0 and Np0 // cand >= 2:
                tn = cand
                break
            cand -= 128

    wbuf = max(2, int(weight_buffers))
    cap = _vmem_capacity_bytes()
    budget = max(cap - (16 << 20), cap // 2)   # headroom for Mosaic scratch

    def working_set(tm_, tn_, tk_):
        ws = (2 * tm_ * tk_ * x_item          # double-buffered x tiles
              + wbuf * tk_ * tn_ * w_item     # buffered weight tiles
              + 2 * tm_ * tn_ * o_item)       # double-buffered output tiles
        if not out_is_f32:
            ws += tm_ * tn_ * 4               # f32 accumulator scratch
        return ws

    while working_set(tm, tn, tk) > budget:
        if tn >= tk and tn >= tm and tn > 128:
            tn = _halve(tn, 128)
        elif tk >= tm and tk > 128:
            tk = _halve(tk, 128)
        elif tm > m_gran:
            tm = _halve(tm, m_gran)
        else:
            break

    working = working_set(tm, tn, tk)
    vmem_limit = int(min(budget, max(working + (8 << 20), 32 << 20)))

    # ---- pad only as a fallback (no-op for granule/divisor-shaped inputs) ----
    Mp = _round_up(M, tm)
    Kp = _round_up(d_in, tk)
    Np = _round_up(d_out, tn)
    if (Mp, Kp) != (M, d_in):
        x2d = jnp.pad(x2d, ((0, Mp - M), (0, Kp - d_in)))
    if (Kp, Np) != (d_in, d_out):
        w_t = jnp.pad(w_t, ((0, Kp - d_in), (0, Np - d_out)))

    n_m, n_n, n_k = Mp // tm, Np // tn, Kp // tk

    # Actual tiled HBM traffic: x re-read per j block, weight re-read per i block.
    cost = pl.CostEstimate(
        flops=2 * M * d_out * d_in,
        transcendentals=0,
        bytes_accessed=(n_n * M * d_in * x_item
                        + n_m * d_in * d_out * w_item
                        + M * d_out * o_item),
    )

    w_spec_kwargs = {}
    if wbuf != 2:
        w_spec_kwargs["pipeline_mode"] = pl.Buffered(wbuf)

    if n_k == 1:
        # Shallow-K fast path: no accumulator, 2-D parallel grid.
        kernel = _matmul_kernel_single_k
        grid = (n_m, n_n)
        in_specs = [
            pl.BlockSpec((tm, tk), lambda i, j: (i, 0)),                 # x
            pl.BlockSpec((tk, tn), lambda i, j: (0, j), **w_spec_kwargs),  # w.T
        ]
        out_specs = pl.BlockSpec((tm, tn), lambda i, j: (i, j))
        scratch_shapes = []
        dims = ("parallel", "parallel")
    else:
        grid = (n_m, n_n, n_k)
        in_specs = [
            pl.BlockSpec((tm, tk), lambda i, j, k: (i, k)),                 # x
            pl.BlockSpec((tk, tn), lambda i, j, k: (k, j), **w_spec_kwargs),  # w.T
        ]
        out_specs = pl.BlockSpec((tm, tn), lambda i, j, k: (i, j))
        dims = ("parallel", "parallel", "arbitrary")
        if out_is_f32:
            kernel = _matmul_kernel_acc_inplace
            scratch_shapes = []
        else:
            kernel = _matmul_kernel_acc_scratch
            scratch_shapes = [pltpu.VMEM((tm, tn), jnp.float32)]

    out2d = pl.pallas_call(
        kernel,
        out_shape=jax.ShapeDtypeStruct((Mp, Np), out_dtype),
        grid_spec=pltpu.PrefetchScalarGridSpec(
            num_scalar_prefetch=0,
            grid=grid,
            in_specs=in_specs,
            out_specs=out_specs,
            scratch_shapes=scratch_shapes,
        ),
        compiler_params=pltpu.CompilerParams(
            dimension_semantics=dims,
            vmem_limit_bytes=vmem_limit,
        ),
        cost_estimate=cost,
    )(x2d, w_t)

    if (Mp, Np) != (M, d_out):
        out2d = out2d[:M, :d_out]
    return out2d.reshape(batch, seq, d_out)


# ------------------------------- test -------------------------------------- #

if __name__ == "__main__":
    key = jax.random.PRNGKey(0)
    kx, kw, kx2, kw2, kx3, kw3 = jax.random.split(key, 6)

    batch, seq = 2, 8

    # case 1: f32, single-K fast path, weight pre-transposed once (no per-call
    # transpose HBM pass).
    d_in, d_out = 128, 256
    x = jax.random.normal(kx, (batch, seq, d_in), dtype=jnp.float32)
    weight = jax.random.normal(kw, (d_out, d_in), dtype=jnp.float32) * 0.02
    w_prepped = prepare_weight(weight)      # done once at "parameter load" time

    out = custom_mlp_layer_forward(x, w_prepped, weight_is_transposed=True)
    out = jax.block_until_ready(out)
    ref = x @ weight.T
    assert out.shape == (batch, seq, d_out)
    assert jnp.allclose(out, ref, atol=1e-4, rtol=1e-4), "mismatch (single-K)"

    # case 2: f32 output, multi-K path accumulating directly into the output tile.
    d_in2, d_out2 = 256, 384
    x2 = jax.random.normal(kx2, (batch, seq, d_in2), dtype=jnp.float32)
    w2 = jax.random.normal(kw2, (d_out2, d_in2), dtype=jnp.float32) * 0.02
    out2 = jax.block_until_ready(custom_mlp_layer_forward(x2, w2, tk=128))
    ref2 = x2 @ w2.T
    assert out2.shape == (batch, seq, d_out2)
    assert jnp.allclose(out2, ref2, atol=1e-4, rtol=1e-4), "mismatch (f32 acc)"

    # case 3: bf16 operands/output, multi-K path with f32 scratch accumulator.
    d_in3, d_out3 = 256, 256
    x3 = jax.random.normal(kx3, (batch, seq, d_in3), jnp.float32).astype(jnp.bfloat16)
    w3 = (jax.random.normal(kw3, (d_out3, d_in3), jnp.float32) * 0.02).astype(jnp.bfloat16)
    out3 = jax.block_until_ready(custom_mlp_layer_forward(x3, w3, tk=128))
    ref3 = (x3.astype(jnp.float32) @ w3.astype(jnp.float32).T).astype(jnp.bfloat16)
    assert out3.shape == (batch, seq, d_out3)
    assert jnp.allclose(out3.astype(jnp.float32), ref3.astype(jnp.float32),
                        atol=2e-2, rtol=2e-2), "mismatch (bf16 scratch acc)"

    # case 4: recommended fast path — bf16 compute on f32 params, f32 accumulation.
    out4 = jax.block_until_ready(
        custom_mlp_layer_forward(x, w_prepped, weight_is_transposed=True,
                                 compute_dtype=jnp.bfloat16))
    assert jnp.allclose(out4, ref, atol=2e-2, rtol=2e-2), "mismatch (bf16 compute)"

    print("KERNEL_OK")
</pallas_src>

<mosaic_0001>
module attributes {stable_mosaic.version = 11 : i64} {
  func.func @_matmul_kernel_single_k(%arg0: i32, %arg1: i32, %arg2: memref<16x128xf32, #tpu.memory_space<vmem>>, %arg3: memref<128x128xf32, #tpu.memory_space<vmem>>, %arg4: memref<16x128xf32, #tpu.memory_space<vmem>>) attributes {dimension_semantics = [#tpu.dimension_semantics<parallel>, #tpu.dimension_semantics<parallel>], iteration_bounds = array<i64: 1, 2>, scalar_prefetch = 0 : i64, scratch_operands = 0 : i64, tpu.core_type = #tpu.core_type<tc>, window_params = [{transform_indices = @transform_0, window_bounds = array<i64: 16, 128>}, {transform_indices = @transform_1, window_bounds = array<i64: 128, 128>}, {transform_indices = @transform_2, window_bounds = array<i64: 16, 128>}]} {
    %c0 = arith.constant 0 : index
    %c0_0 = arith.constant 0 : index
    %0 = vector.load %arg2[%c0, %c0_0] : memref<16x128xf32, #tpu.memory_space<vmem>>, vector<16x128xf32>
    %c0_1 = arith.constant 0 : index
    %c0_2 = arith.constant 0 : index
    %1 = vector.load %arg3[%c0_1, %c0_2] : memref<128x128xf32, #tpu.memory_space<vmem>>, vector<128x128xf32>
    %cst = arith.constant dense<0.000000e+00> : vector<16x128xf32>
    %2 = tpu.matmul %0, %1, %cst {dimension_numbers = #tpu.dot_dimension_numbers<[1], [0], [0], [1], [0, 0, 1, 1], [], []>} : vector<16x128xf32>, vector<128x128xf32>, vector<16x128xf32> -> vector<16x128xf32>
    %c0_3 = arith.constant 0 : index
    %c0_4 = arith.constant 0 : index
    %3 = vector.load %arg4[%c0_3, %c0_4] : memref<16x128xf32, #tpu.memory_space<vmem>>, vector<16x128xf32>
    tpu.vector_store %arg4[%c0_3, %c0_4], %2 {strides = array<i32>} : memref<16x128xf32, #tpu.memory_space<vmem>>, vector<16x128xf32>,
    return
  }
  func.func @transform_0(%arg0: i32, %arg1: i32) -> (i32, i32) {
    %c0_i32 = arith.constant 0 : i32
    %c0_i32_0 = arith.constant 0 : i32
    return %arg0, %c0_i32 : i32, i32
  }
  func.func @transform_1(%arg0: i32, %arg1: i32) -> (i32, i32) {
    %c0_i32 = arith.constant 0 : i32
    %c0_i32_0 = arith.constant 0 : i32
    return %c0_i32, %arg1 : i32, i32
  }
  func.func @transform_2(%arg0: i32, %arg1: i32) -> (i32, i32) {
    %c0_i32 = arith.constant 0 : i32
    return %arg0, %arg1 : i32, i32
  }
}

</mosaic_0001>

<bundles_post_ra>
// kernel: tpu_custom_call.1
= control target key start
LH: loop header
LB: loop body
LE: loop exit
PB: predicated region body
PF: predicated region fallthrough
CT: control target
= control target key end

     0   :  { %7 = vsyncpa [#allocation3], 0  ;;  %s1001_s0 = inlined_call_operand.hbm [shape: f32[16,128], index: 0, kind: input, shape index: {}]   ;;  %s1002_s1 = inlined_call_operand.hbm [shape: f32[128,256], index: 1, kind: input, shape index: {}]   ;;  %s1003_s2 = inlined_call_operand.hbm [shape: f32[16,256], index: 2, kind: output, shape index: {}]  }
   0x1   :  { %8 = vsyncpa [#allocation6], 0 }
   0x2   :  { %10 = vsyncpa [#allocation6 + $0x1], 0 }
   0x3   :  { %11 = vsyncpa [#allocation4], 0 }
   0x4   :  { %13 = vsyncpa [#allocation4 + $0x1], 0  ;;  %s757_s9 = smov 0   ;;  %s759_s10 = smov 0  }
   0x5   :  { %s761_s11 = smov 0   ;;  %s763_s12 = smov 0  }
   0x6   :  { %s765_s13 = smov 0   ;;  %s767_s14 = smov 0  }
   0x7 LB: > { %s408_s15 = sadd.s32 4294967295, %s731_s14   ;;  %s409_s16 = sadd.s32 4294967294, %s731_s14   ;;  %s731_s14 = sphi %s767_s14, %s19_s14   ;;  %s727_s13 = sphi %s765_s13, %s1029_s13   ;;  %s723_s12 = sphi %s763_s12, %s1028_s12   ;;  %s719_s11 = sphi %s761_s11, %s1027_s11   ;;  %s715_s10 = sphi %s759_s10, %s1026_s10   ;;  %s711_s9 = sphi %s757_s9, %s1025_s9  }
   0x8   : > { %p71_p0 = scmp.ne.s32.totalorder %s719_s11, %s715_s10  ;;  %p72_p1 = scmp.eq.s32.totalorder %s731_s14, 0 }
   0x9   : > { %p77_p2 = scmp.ne.s32.totalorder %s715_s10, %s711_s9  ;;  %p794_p3 = scmp.eq.s32.totalorder %s408_s15, 0 }
   0xa   : > { %p798_p4 = por %p72_p1, %p71_p0  ;;  %p103_p5 = scmp.eq.s32.totalorder %s408_s15, 1 }
   0xb   : > { %s1010_s17 = scalar_select %p794_p3, 1, 0 }
   0xc   : > { %p804_p6 = por %p794_p3, %p77_p2  ;;  %p109_p7 = scmp.eq.s32.totalorder %s409_s16, 1 }
   0xd   : > { %p808_p8 = por %p103_p5, %p71_p0  ;;  %p410_p9 = scmp.ge.s32.totalorder %s731_s14, 1 }
   0xe   : > { %s1012_s19 = scalar_select %p804_p6, 1, 0 }
   0xf   : > { %s1013_s20 = scalar_select %p808_p8, 1, 0 }
  0x10   : > { %p813_p10 = por %p109_p7, %p77_p2  ;;  %p116_p11 = scmp.lt.s32.totalorder %s731_s14, 3 }
  0x11   : > { %s733_s23 = smov [#allocation2]   ;;  %p529_p1 = scmp.lt.s32.totalorder %s731_s14, 2 }
  0x12   : > { %s1014_s21 = scalar_select %p813_p10, 1, 0 }
  0x13   : > { %p818_p12 = pnand %p410_p9, %p116_p11  ;;  %s131_s24 = sshll.u32 %s733_s23, 4  ;;  %s822_s24 = int_to_ptr.vmem [resolvable:$true] %s131_s24 }
  0x14   : > { %p836_p2 = pnand %p529_p1, %p798_p4  ;;  %s28_s27 = sadd.s32 1, %s727_s13 }
  0x15   : > { %s1015_s22 = scalar_select %p818_p12, 1, 0 }
  0x16   : > { %p516_p13 = pneg %p818_p12  ;;  %s587_s30 = scalar_lea.hbm %s1001_s0, 256 }
  0x17   : > { %s1017_s26 = scalar_select %p836_p2, 1, 0 }
  0x18   : > { %p830_p5 = pnand %p516_p13, %p794_p3  ;;  %p588_p7 = scmp.ne.s32.totalorder %s1001_s0, %s587_s30 }
  0x19   : > { %p594_p4 = scmp.lt.u32.totalorder %s587_s30, %s1001_s0 }
  0x1a   : > { %p589_p9 = pneg %p830_p5 }
  0x1c   : > { %p590_p11 = pnand %p589_p9, %p588_p7 }
  0x1e   : > { %p591_p13 = pneg %p590_p11 }
  0x20   : > { %p596_p1 = pnand %p594_p4, %p591_p13 }
  0x22   : > { %599 = shalt.err (!%p596_p1)
}
  0x23   : > { %s600_s7 = scalar_lea.vmem %s822_s24, 256  ;;  %p608_p6 = scmp.lt.s32.totalorder %s822_s24, %s822_s24 }
  0x24   : > { %p601_p0 = scmp.ne.s32.totalorder %s822_s24, %s600_s7  ;;  %p609_p3 = scmp.lt.s32.totalorder %s600_s7, %s600_s7 }
  0x26   : > { %p603_p10 = pnand %p601_p0, %p589_p9  ;;  %p610_p12 = por %p609_p3, %p608_p6 }
  0x28   : > { %p604_p8 = pneg %p603_p10 }
  0x2a   : > { %p611_p2 = pnand %p610_p12, %p604_p8 }
  0x2c   : > { %614 = shalt.err (!%p611_p2)
}
  0x2d   : > { %s734_s8 = smov 128   ;;  %s735_s15 = smov 8  }
  0x2e   : > { %519 = dma.hbm_to_vmem [thread:$0]  (!%p830_p5), %s1001_s0, 256, %s822_s24, [#allocation3], %s734_s8, %s734_s8, %s735_s15  }
  0x2f   : > { %p29_p3 = scmp.ge.s32.totalorder %s28_s27, 2  ;;  %s64_s23 = sadd.s32 1, %s719_s11 }
  0x30   : > { %s145_s28 = sand.u32 1, %s719_s11   ;;  %s414_s3 = sshll.u32 %s727_s13, 7 }
  0x31   : > { %s1031_s27 = smov (%p29_p3, %s28_s27), 0  ;;  %s413_s29 = sshll.u32 %s145_s28, 7 }
  0x32   : > { %s61_s30 = ssub.s32 %s727_s13, %s1031_s27  ;;  %s875_s5 = scalar_lea.hbm %s1002_s1, %s414_s3 }
  0x33   : > { %p62_p6 = scmp.eq.s32.totalorder %s61_s30, 0  ;;  %s149_s24 = scalar_lea.vmem [#allocation5], %s413_s29 }
  0x34   : > { %s155_s6 = sshll.u32 %s149_s24, 4  ;;  %s882_s16 = scalar_lea.sflag [#allocation6], %s145_s28  ;;  %s880_s6 = int_to_ptr.vmem [resolvable:$true] %s155_s6 }
  0x35   : > { %s878_s7 = scalar_select %p62_p6, %s719_s11, %s64_s23  }
  0x36   : > { %s615_s18 = scalar_lea.hbm %s875_s5, 2048  ;;  %p1018_p10 = scmp.ne.s32.totalorder %s1017_s26, 0 }
  0x37   : > { %p616_p8 = scmp.ne.s32.totalorder %s875_s5, %s615_s18  ;;  %s620_s25 = scalar_lea.hbm %s1002_s1, 4096 }
  0x38   : > { %p617_p12 = pneg %p1018_p10  ;;  %p621_p2 = scmp.lt.u32.totalorder %s875_s5, %s1002_s1 }
  0x39   : > { %p622_p7 = scmp.lt.u32.totalorder %s620_s25, %s615_s18  ;;  %p624_p11 = scmp.lt.u32.totalorder %s615_s18, %s875_s5 }
  0x3a   : > { %p618_p0 = pnand %p617_p12, %p616_p8 }
  0x3b   : > { %p623_p9 = por %p622_p7, %p621_p2 }
  0x3c   : > { %p619_p5 = pneg %p618_p0 }
  0x3d   : > { %p625_p13 = por %p624_p11, %p623_p9 }
  0x3f   : > { %p626_p4 = pnand %p625_p13, %p619_p5 }
  0x41   : > { %629 = shalt.err (!%p626_p4)
}
  0x42   : > { %s630_s23 = scalar_lea.vmem %s880_s6, 2048  ;;  %s736_s28 = smov [#allocation5]  }
  0x43   : > { %p631_p1 = scmp.ne.s32.totalorder %s880_s6, %s630_s23  ;;  %s635_s24 = sshll.u32 %s736_s28, 4  ;;  %s636_s24 = int_to_ptr.vmem [resolvable:$false] %s635_s24 }
  0x44   : > { %s637_s30 = scalar_lea.vmem %s636_s24, 4096  ;;  %p638_p8 = scmp.lt.s32.totalorder %s880_s6, %s636_s24 }
  0x45   : > { %p633_p3 = pnand %p631_p1, %p617_p12  ;;  %p639_p0 = scmp.lt.s32.totalorder %s637_s30, %s630_s23 }
  0x47   : > { %p634_p6 = pneg %p633_p3  ;;  %p640_p2 = por %p639_p0, %p638_p8 }
  0x49   : > { %p641_p7 = pnand %p640_p2, %p634_p6 }
  0x4b   : > { %644 = shalt.err (!%p641_p7)
}
  0x4c   : > { %s737_s18 = smov 256   ;;  %p1019_p12 = scmp.ne.s32.totalorder %s1015_s22, 0 }
  0x4d   : > { %523 = dma.hbm_to_vmem [thread:$0]  (!%p1018_p10), %s875_s5, 2048, %s880_s6, %s882_s16, %s737_s18, %s734_s8, %s735_s15  }
  0x4e   : > { %167 = sbr.rel (%p1019_p12) target bundleno = 354 (0x162), region = 28  ;;  %p1020_p5 = scmp.ne.s32.totalorder (!%p1019_p12), %s1010_s17, 0 }
  0x55   : > { %698 = dma.done.wait (%p1020_p5), [#allocation3], 256  }
  0x56   : > { %700 = vsyncadd (%p1020_p5), [#allocation3], 4294967040  ;;  %s919_s3 = sand.u32 1, %s715_s10   ;;  %p1021_p10 = scmp.ne.s32.totalorder %s1012_s19, 0 }
  0x57   : > { %s417_s26 = sshll.u32 %s919_s3, 7  ;;  %s174_s25 = scalar_lea.sflag [#allocation6], %s919_s3 }
  0x58   : > { %s923_s29 = scalar_lea.vmem [#allocation5], %s417_s26 }
  0x59   : > { %702 = dma.done.wait (%p1021_p10), %s174_s25, 2048  }
  0x5a   : > { %704 = vsyncadd (%p1021_p10), %s174_s25, 4294965248  ;;  %v202_v0 = vld [vmem:[%s923_s29] sm:$0xff]  ;;  %v203_v1 = vld [vmem:[%s923_s29 + $0x8] sm:$0xff]  ;;  %s418_s17 = sshll.u32 %s919_s3, 4  ;;  %s420_s8 = sshll.u32 %s723_s12, 7 }
  0x5b   : > { %v204_v2 = vld [vmem:[%s923_s29 + $0x10] sm:$0xff]  ;;  %v476_v3 = vpack.c.bf16 %v203_v1, %v202_v0  ;;  %v205_v4 = vld [vmem:[%s923_s29 + $0x18] sm:$0xff]  ;;  %v206_v6 = vld [vmem:[%s923_s29 + $0x20] sm:$0xff]  ;;  %s197_s19 = scalar_lea.vmem [#allocation7], %s418_s17  ;;  %s952_s6 = scalar_lea.hbm %s1003_s2, %s420_s8 }
  0x5c   : > { %v480_v5 = vpack.c.bf16 %v205_v4, %v204_v2  ;;  %v207_v7 = vld [vmem:[%s923_s29 + $0x28] sm:$0xff]  ;;  %v200_v9 = vld [vmem:[#allocation2] sm:$0xff]  ;;  %v209_v11 = vld [vmem:[%s923_s29 + $0x38] sm:$0xff]  ;;  %s311_s22 = sshll.u32 %s197_s19, 4  ;;  %s296_s16 = scalar_lea.sflag [#allocation4], %s919_s3  ;;  %s947_s22 = int_to_ptr.vmem [resolvable:$true] %s311_s22 }
  0x5d   : > { %477 = vmatprep.subr.bf16.mxu0 %v476_v3  ;;  %v484_v8 = vpack.c.bf16 %v207_v7, %v206_v6  ;;  %v208_v10 = vld [vmem:[%s923_s29 + $0x30] sm:$0xff]  ;;  %473 = vmatprep.mubr.f32.mxu0 %v200_v9  ;;  %v210_v13 = vld [vmem:[%s923_s29 + $0x40] sm:$0xff]  ;;  %v211_v14 = vld [vmem:[%s923_s29 + $0x48] sm:$0xff]  ;;  %s645_s4 = scalar_lea.vmem %s947_s22, 256  ;;  %p1022_p11 = scmp.ne.s32.totalorder %s1013_s20, 0 }
  0x5e   : > { %479 = vmatpush3.bf16.msra.mxu0 %v476_v3  ;;  %v488_v12 = vpack.c.bf16 %v209_v11, %v208_v10  ;;  %v492_v15 = vpack.c.bf16 %v211_v14, %v210_v13  ;;  %v212_v16 = vld [vmem:[%s923_s29 + $0x50] sm:$0xff]  ;;  %v213_v17 = vld [vmem:[%s923_s29 + $0x58] sm:$0xff]  ;;  %v214_v19 = vld [vmem:[%s923_s29 + $0x60] sm:$0xff]  ;;  %p646_p9 = scmp.ne.s32.totalorder %s947_s22, %s645_s4  ;;  %s738_s12 = smov [#allocation7]  }
  0x5f   : > { %481 = vmatprep.subr.bf16.mxu0 %v480_v5  ;;  %v496_v18 = vpack.c.bf16 %v213_v17, %v212_v16  ;;  %v215_v20 = vld [vmem:[%s923_s29 + $0x68] sm:$0xff]  ;;  %v216_v22 = vld [vmem:[%s923_s29 + $0x70] sm:$0xff]  ;;  %v217_v23 = vld [vmem:[%s923_s29 + $0x78] sm:$0xff]  ;;  %s649_s23 = sshll.u32 %s738_s12, 4  ;;  %s650_s23 = int_to_ptr.vmem [resolvable:$false] %s649_s23 }
  0x60   : > { %v500_v21 = vpack.c.bf16 %v215_v20, %v214_v19  ;;  %v504_v24 = vpack.c.bf16 %v217_v23, %v216_v22  ;;  %v201_v25 = vld [vmem:[#allocation2 + $0x8] sm:$0xff]  ;;  %p647_p13 = pnand %p646_p9, %p1022_p11  ;;  %s651_s28 = scalar_lea.vmem %s650_s23, 512 }
  0x61   : > { %p652_p1 = scmp.lt.s32.totalorder %s947_s22, %s650_s23  ;;  %p653_p3 = scmp.lt.s32.totalorder %s651_s28, %s645_s4 }
  0x62   : > { %483 = vmatpush3.bf16.msra.mxu0 %v480_v5  ;;  %p648_p4 = pneg %p647_p13 }
  0x63   : > { %485 = vmatprep.subr.bf16.mxu0 %v484_v8  ;;  %p654_p6 = por %p653_p3, %p652_p1 }
  0x65   : > { %p655_p8 = pnand %p654_p6, %p648_p4 }
  0x66   : > { %487 = vmatpush3.bf16.msra.mxu0 %v484_v8 }
  0x67   : > { %489 = vmatprep.subr.bf16.mxu0 %v488_v12 }
  0x6a   : > { %491 = vmatpush3.bf16.msra.mxu0 %v488_v12 }
  0x6b   : > { %493 = vmatprep.subr.bf16.mxu0 %v492_v15 }
  0x6e   : > { %495 = vmatpush3.bf16.msra.mxu0 %v492_v15 }
  0x6f   : > { %497 = vmatprep.subr.bf16.mxu0 %v496_v18 }
  0x72   : > { %499 = vmatpush3.bf16.msra.mxu0 %v496_v18 }
  0x73   : > { %501 = vmatprep.subr.bf16.mxu0 %v500_v21 }
  0x76   : > { %503 = vmatpush3.bf16.msra.mxu0 %v500_v21 }
  0x77   : > { %505 = vmatprep.subr.bf16.mxu0 %v504_v24 }
  0x7a   : > { %507 = vmatpush3.bf16.msra.mxu0 %v504_v24 }
  0x7d   : > { %474 = vmatmul.mubr.f32.vlgmr.msra.gmra.mrb[0].mxu0 %v201_v25 }
 0x150   : > { %v475_v26 = vpop.f32.mrb[0].mxu0 }
 0x151   : > { %294 = vst [vmem:[%s197_s19 + $0x8] sm:$0xff] %v475_v26  ;;  %v284_v27 = vpop.f32.mrb[1].mxu0 }
 0x152   : > { %293 = vst [vmem:[%s197_s19] sm:$0xff] %v284_v27 }
 0x153   : > { %658 = shalt.err (!%p655_p8)
}
 0x154   : > { %s659_s24 = scalar_lea.hbm %s952_s6, 256  ;;  %s663_s26 = scalar_lea.hbm %s1003_s2, 512 }
 0x155   : > { %p660_p0 = scmp.ne.s32.totalorder %s952_s6, %s659_s24  ;;  %p664_p12 = scmp.lt.u32.totalorder %s952_s6, %s1003_s2 }
 0x156   : > { %p665_p5 = scmp.lt.u32.totalorder %s663_s26, %s659_s24  ;;  %p667_p9 = scmp.lt.u32.totalorder %s659_s24, %s952_s6 }
 0x157   : > { %p661_p2 = pnand %p660_p0, %p1022_p11 }
 0x158   : > { %p666_p10 = por %p665_p5, %p664_p12 }
 0x159   : > { %p662_p7 = pneg %p661_p2 }
 0x15a   : > { %p668_p13 = por %p667_p9, %p666_p10 }
 0x15c   : > { %p669_p4 = pnand %p668_p13, %p662_p7 }
 0x15e   : > { %672 = shalt.err (!%p669_p4)
}
 0x15f   : > { %s739_s17 = smov 128   ;;  %s740_s19 = smov 256  }
 0x160   : > { %s741_s8 = smov 8  }
 0x161   : > { %514 = dma.vmem_to_hbm [thread:$0]  (%p1022_p11), %s947_s22, 256, %s952_s6, %s296_s16, %s739_s17, %s740_s19, %s741_s8  }
 0x162 PF: > { %s326_s15 = sand.u32 1, %s711_s9   ;;  %p1023_p1 = scmp.ne.s32.totalorder %s1014_s21, 0 }
 0x163   : > { %p1024_p3 = scmp.ge.s32.totalorder %s731_s14, 2  ;;  %s327_s5 = scalar_lea.sflag [#allocation4], %s326_s15 }
 0x165   : > { %p525_p6 = pnand %p1024_p3, %p1023_p1 }
 0x167   : > { %706 = dma.done.wait (!%p525_p6), %s327_s5, 256  }
 0x168   : > { %708 = vsyncadd (!%p525_p6), %s327_s5, 4294967040  ;;  %s19_s14 = sadd.s32 1, %s731_s14   ;;  %s1025_s9 = smov %s715_s10 }
 0x169   : > { %p16_p8 = scmp.ge.s32.totalorder %s19_s14, 4   ;;  %s1026_s10 = smov %s719_s11 }
 0x16a   : > { %s1027_s11 = smov %s878_s7  ;;  %s1028_s12 = smov %s727_s13 }
 0x16b   : > { %s1029_s13 = smov %s1031_s27  ;;  %18 = sbr.rel (!%p16_p8) target bundleno = 7 (0x7), region = 79 }
 0x172   :  { %332 = vsyncpa [#allocation3], 1 }
 0x173   :  { %334 = vsyncpa [#allocation3 + $0x1], 1 }
 0x174   :  { %335 = vsyncpa [#allocation6], 1 }
 0x175   :  { %337 = vsyncpa [#allocation6 + $0x1], 1 }
 0x176   :  { %338 = vsyncpa [#allocation4], 1 }
 0x177   :  { %340 = vsyncpa [#allocation4 + $0x1], 1 }

</bundles_post_ra>
